<compile_context>
chip_gen: v5e
topology: v5e:2x2
jax: 0.10.0
libtpu: 0.0.40
codegen_flags: <defaults>
</compile_context>

<pallas_src>
import functools

import jax
import jax.numpy as jnp
from jax.experimental import pallas as pl
from jax.experimental.pallas import tpu as pltpu


def _round_up(x, m):
    return (x + m - 1) // m * m


def quaternion_weight(r, i, j, k):
    """Hamilton-product weight assembly, mirrors the torch.cat structure -> (4*out_c, 4*in_c, K)."""
    row0 = jnp.concatenate([r, -i, -j, -k], axis=0)
    row1 = jnp.concatenate([i, r, -k, j], axis=0)
    row2 = jnp.concatenate([j, k, r, -i], axis=0)
    row3 = jnp.concatenate([k, -j, i, r], axis=0)
    return jnp.concatenate([row0, row1, row2, row3], axis=1)


def _qconvt1d_kernel(x_ref, w_ref, b_ref, o_ref, *, TM, C_pad, off_table):
    # x_ref: (L_in_pad, C_in4)        channels-last input row (+ zero halo), resident per n
    # w_ref: (S, R*C_in4, C_pad)      per-phase folded-tap weights (taps in the contraction)
    # b_ref: (1, C_pad)               f32 bias, zero-padded to lane width
    # o_ref: (TM, S*C_pad)            output tile; phase-major inside the lane dim
    m0 = pl.multiple_of(pl.program_id(1) * TM, 8)
    bias = b_ref[...]                                           # (1, C_pad) f32
    for p, offs in enumerate(off_table):                        # static unroll over phases
        # im2col: gather the R (static-offset) input windows and fold taps into channels.
        cols = [x_ref[pl.ds(m0 + off, TM), :] for off in offs]
        x_cols = cols[0] if len(cols) == 1 else jnp.concatenate(cols, axis=-1)
        res = jnp.dot(x_cols, w_ref[p], preferred_element_type=jnp.float32)  # (TM, C_pad)
        o_ref[:, p * C_pad:(p + 1) * C_pad] = (res + bias).astype(o_ref.dtype)


def qconv_transpose1d(x, r_w, i_w, j_w, k_w, bias, *, stride=1, padding=0,
                      output_padding=0, dilation=1, groups=1):
    """x: (N, 4*in_c, L) NCW (PyTorch convention). Returns (N, 4*out_c, L_out)."""
    # TODO(synk): groups > 1 path not implemented (module default groups=1).
    assert groups == 1
    N, C_in4, L = x.shape
    out_c, in_c, K = r_w.shape
    assert C_in4 == 4 * in_c
    C_out4 = 4 * out_c
    S, P, D, OP = stride, padding, dilation, output_padding

    L_out = (L - 1) * S - 2 * P + D * (K - 1) + OP + 1
    M_max = -(-L_out // S)                      # outputs per phase (upper bound)

    # ---- polyphase tap decomposition (static, host-side) --------------------------------
    # out[n, co, m*S + p] = sum_{k: (p+P-D*k) % S == 0} sum_ci
    #                         x[n, ci, m + (p+P-D*k)//S] * W[ci, co, k]
    taps = [[k for k in range(K) if (p + P - D * k) % S == 0] for p in range(S)]
    R = max(1, max(len(t) for t in taps))       # taps per phase, padded with zero rows
    raw_offs = [[(p + P - D * k) // S for k in taps[p]] + [0] * (R - len(taps[p]))
                for p in range(S)]
    min_off = min(min(o) for o in raw_offs)
    max_off = max(max(o) for o in raw_offs)

    # ---- tile sizes ----------------------------------------------------------------------
    C_pad = max(128, _round_up(C_out4, 128))    # lane-dense output channels
    tm_cap = max(8, (2 * 1024 * 1024 // (4 * S * C_pad)) // 8 * 8)   # ~2 MiB output tile
    TM = max(8, min(512, tm_cap, _round_up(M_max, 8)))
    M_tiles = -(-M_max // TM)
    M_pad = M_tiles * TM

    # ---- input: single NCW->NLC transpose + tiny halo pad (NO zero-insert upsample) ------
    pad_left = max(0, -min_off)
    pad_right = max(0, M_pad + max_off - L)
    x_nlc = jnp.transpose(x, (0, 2, 1))                                   # (N, L, C_in4)
    x_nlc = jnp.pad(x_nlc, ((0, 0), (pad_left, pad_right), (0, 0)))
    L_in_pad = x_nlc.shape[1]
    off_table = tuple(tuple(o + pad_left for o in raw_offs[p]) for p in range(S))

    # ---- per-phase folded-tap weights: (S, R*C_in4, C_pad), zero rows for missing taps ----
    big_w = quaternion_weight(r_w, i_w, j_w, k_w)                         # (C_out4, C_in4, K)
    Wt = jnp.transpose(big_w, (1, 2, 0))                                  # (ci, k, co)
    w_all = jnp.zeros((S, R, C_in4, C_pad), x.dtype)
    for p in range(S):
        for r, k in enumerate(taps[p]):
            w_all = w_all.at[p, r, :, :C_out4].set(Wt[:, k, :].astype(x.dtype))
    w_all = w_all.reshape(S, R * C_in4, C_pad)
    bias_pad = jnp.zeros((1, C_pad), jnp.float32).at[0, :C_out4].set(bias.astype(jnp.float32))

    kern = functools.partial(_qconvt1d_kernel, TM=TM, C_pad=C_pad, off_table=off_table)
    out_flat = pl.pallas_call(
        kern,
        out_shape=jax.ShapeDtypeStruct((N, M_pad, S * C_pad), x.dtype),
        grid=(N, M_tiles),
        in_specs=[
            # Whole (halo-padded) input row resident per batch element; m-tiles re-slice it
            # in VMEM (block index constant along m -> no re-DMA per step).
            # TODO(synk): for very long L, tile L with a manual halo'd double-buffer DMA.
            pl.BlockSpec((None, L_in_pad, C_in4), lambda n, m: (n, 0, 0)),
            pl.BlockSpec((S, R * C_in4, C_pad), lambda n, m: (0, 0, 0)),
            pl.BlockSpec((1, C_pad), lambda n, m: (0, 0)),
        ],
        out_specs=pl.BlockSpec((None, TM, S * C_pad), lambda n, m: (n, m, 0)),
        compiler_params=pltpu.CompilerParams(
            dimension_semantics=("parallel", "parallel"),
            # Fits v7x's 32 MiB scoped / 64 MiB physical VMEM; on v5e/v6e (128 MiB) this
            # can be raised together with TM for long sequences.
            vmem_limit_bytes=32 * 1024 * 1024,
        ),
    )(x_nlc, w_all, bias_pad)

    # Interleave the phases, crop channel/length padding, back to NCW for API parity.
    # (In a real model keep activations channels-last and skip these transposes.)
    out_nlc = out_flat.reshape(N, M_pad * S, C_pad)[:, :L_out, :C_out4]
    return jnp.transpose(out_nlc, (0, 2, 1))                              # (N, 4*out_c, L_out)


def _reference(x, big_w, bias, stride, padding, output_padding, dilation):
    """Direct scatter-form conv_transpose1d reference (pure JAX, independent path)."""
    N, C_in4, L = x.shape
    C_out4, _, K = big_w.shape
    L_out = (L - 1) * stride - 2 * padding + dilation * (K - 1) + output_padding + 1
    W = jnp.transpose(big_w, (1, 0, 2)).astype(jnp.float32)   # (ci, co, k)
    xf = x.astype(jnp.float32)
    out = jnp.zeros((N, C_out4, L_out), jnp.float32)
    for s in range(L):
        for k in range(K):
            t = s * stride - padding + dilation * k
            if 0 <= t < L_out:
                out = out.at[:, :, t].add(jnp.einsum('nc,cd->nd', xf[:, :, s], W[:, :, k]))
    return out + bias[None, :, None].astype(jnp.float32)


def _run_case(name, key, N, in_c, out_c, K, L, stride, padding, output_padding, dilation,
              nonzero_bias=False):
    kx, kr, ki, kj, kk, kb = jax.random.split(key, 6)
    x = jax.random.normal(kx, (N, 4 * in_c, L), jnp.float32)
    wshape = (out_c, in_c, K)
    r_w = 0.1 * jax.random.normal(kr, wshape, jnp.float32)
    i_w = 0.1 * jax.random.normal(ki, wshape, jnp.float32)
    j_w = 0.1 * jax.random.normal(kj, wshape, jnp.float32)
    k_w = 0.1 * jax.random.normal(kk, wshape, jnp.float32)
    if nonzero_bias:
        bias = 0.1 * jax.random.normal(kb, (4 * out_c,), jnp.float32)
    else:
        bias = jnp.zeros((4 * out_c,), jnp.float32)   # module initializes bias to zeros

    out = qconv_transpose1d(x, r_w, i_w, j_w, k_w, bias, stride=stride, padding=padding,
                            output_padding=output_padding, dilation=dilation)
    out = jax.block_until_ready(out)

    ref = _reference(x, quaternion_weight(r_w, i_w, j_w, k_w), bias,
                     stride, padding, output_padding, dilation)
    assert out.shape == ref.shape, (name, out.shape, ref.shape)
    err = float(jnp.max(jnp.abs(out - ref)))
    assert err < 1e-4, (name, err)


if __name__ == "__main__":
    key = jax.random.PRNGKey(0)
    k1, k2 = jax.random.split(key)
    # Base config: stride-2 transposed-conv upsampler, shapes matching the module defaults.
    _run_case("base", k1, N=2, in_c=4, out_c=8, K=3, L=16,
              stride=2, padding=1, output_padding=1, dilation=1)
    # Stress the polyphase bookkeeping: stride=3, dilation=2, non-128-multiple out channels.
    _run_case("dilated", k2, N=1, in_c=4, out_c=5, K=4, L=9,
              stride=3, padding=2, output_padding=2, dilation=2, nonzero_bias=True)
    print("KERNEL_OK")
</pallas_src>

<mosaic_0001>
module attributes {stable_mosaic.version = 11 : i64} {
  func.func @_qconvt1d_kernel(%arg0: i32, %arg1: i32, %arg2: memref<1x17x16xf32, #tpu.memory_space<vmem>>, %arg3: memref<2x32x128xf32, #tpu.memory_space<vmem>>, %arg4: memref<1x128xf32, #tpu.memory_space<vmem>>, %arg5: memref<1x16x256xf32, #tpu.memory_space<vmem>>) attributes {dimension_semantics = [#tpu.dimension_semantics<parallel>, #tpu.dimension_semantics<parallel>], iteration_bounds = array<i64: 2, 1>, scalar_prefetch = 0 : i64, scratch_operands = 0 : i64, tpu.core_type = #tpu.core_type<tc>, window_params = [{transform_indices = @transform_0, window_bounds = array<i64: 1, 17, 16>}, {pipeline_mode = #tpu.pipeline_mode<synchronous>, transform_indices = @transform_1, window_bounds = array<i64: 2, 32, 128>}, {pipeline_mode = #tpu.pipeline_mode<synchronous>, transform_indices = @transform_2, window_bounds = array<i64: 1, 128>}, {transform_indices = @transform_3, window_bounds = array<i64: 1, 16, 256>}]} {
    %c16_i32 = arith.constant 16 : i32
    %0 = arith.muli %arg1, %c16_i32 : i32
    %1 = tpu.assume_multiple %0, 8 : i32
    %c0 = arith.constant 0 : index
    %c0_0 = arith.constant 0 : index
    %2 = vector.load %arg4[%c0, %c0_0] : memref<1x128xf32, #tpu.memory_space<vmem>>, vector<1x128xf32>
    %c0_i32 = arith.constant 0 : i32
    %3 = arith.addi %1, %c0_i32 : i32
    %c0_1 = arith.constant 0 : index
    %4 = arith.index_cast %3 : i32 to index
    %c0_2 = arith.constant 0 : index
    %5 = vector.load %arg2[%c0_1, %4, %c0_2] : memref<1x17x16xf32, #tpu.memory_space<vmem>>, vector<1x16x16xf32>
    %6 = vector.shape_cast %5 : vector<1x16x16xf32> to vector<16x16xf32>
    %c0_i32_3 = arith.constant 0 : i32
    %7 = arith.addi %1, %c0_i32_3 : i32
    %c0_4 = arith.constant 0 : index
    %8 = arith.index_cast %7 : i32 to index
    %c0_5 = arith.constant 0 : index
    %9 = vector.load %arg2[%c0_4, %8, %c0_5] : memref<1x17x16xf32, #tpu.memory_space<vmem>>, vector<1x16x16xf32>
    %10 = vector.shape_cast %9 : vector<1x16x16xf32> to vector<16x16xf32>
    %11 = tpu.concatenate %6, %10 in 1 : vector<16x16xf32>, vector<16x16xf32> -> vector<16x32xf32>
    %c0_6 = arith.constant 0 : index
    %c0_7 = arith.constant 0 : index
    %c0_8 = arith.constant 0 : index
    %12 = vector.load %arg3[%c0_6, %c0_7, %c0_8] : memref<2x32x128xf32, #tpu.memory_space<vmem>>, vector<1x32x128xf32>
    %13 = vector.shape_cast %12 : vector<1x32x128xf32> to vector<32x128xf32>
    %cst = arith.constant dense<0.000000e+00> : vector<16x128xf32>
    %14 = tpu.matmul %11, %13, %cst {dimension_numbers = #tpu.dot_dimension_numbers<[1], [0], [0], [1], [0, 0, 1, 1], [], []>} : vector<16x32xf32>, vector<32x128xf32>, vector<16x128xf32> -> vector<16x128xf32>
    %15 = vector.broadcast %2 : vector<1x128xf32> to vector<16x128xf32>
    %16 = arith.addf %14, %15 : vector<16x128xf32>
    %c0_9 = arith.constant 0 : index
    %c0_10 = arith.constant 0 : index
    %c0_11 = arith.constant 0 : index
    %17 = vector.load %arg5[%c0_9, %c0_10, %c0_11] : memref<1x16x256xf32, #tpu.memory_space<vmem>>, vector<1x16x128xf32>
    %18 = vector.shape_cast %17 : vector<1x16x128xf32> to vector<16x128xf32>
    %19 = vector.shape_cast %16 : vector<16x128xf32> to vector<1x16x128xf32>
    tpu.vector_store %arg5[%c0_9, %c0_10, %c0_11], %19 {strides = array<i32>} : memref<1x16x256xf32, #tpu.memory_space<vmem>>, vector<1x16x128xf32>,
    %c1_i32 = arith.constant 1 : i32
    %20 = arith.addi %1, %c1_i32 : i32
    %c0_12 = arith.constant 0 : index
    %21 = arith.index_cast %20 : i32 to index
    %c0_13 = arith.constant 0 : index
    %22 = vector.load %arg2[%c0_12, %21, %c0_13] : memref<1x17x16xf32, #tpu.memory_space<vmem>>, vector<1x16x16xf32>
    %23 = vector.shape_cast %22 : vector<1x16x16xf32> to vector<16x16xf32>
    %c0_i32_14 = arith.constant 0 : i32
    %24 = arith.addi %1, %c0_i32_14 : i32
    %c0_15 = arith.constant 0 : index
    %25 = arith.index_cast %24 : i32 to index
    %c0_16 = arith.constant 0 : index
    %26 = vector.load %arg2[%c0_15, %25, %c0_16] : memref<1x17x16xf32, #tpu.memory_space<vmem>>, vector<1x16x16xf32>
    %27 = vector.shape_cast %26 : vector<1x16x16xf32> to vector<16x16xf32>
    %28 = tpu.concatenate %23, %27 in 1 : vector<16x16xf32>, vector<16x16xf32> -> vector<16x32xf32>
    %c1 = arith.constant 1 : index
    %c0_17 = arith.constant 0 : index
    %c0_18 = arith.constant 0 : index
    %29 = vector.load %arg3[%c1, %c0_17, %c0_18] : memref<2x32x128xf32, #tpu.memory_space<vmem>>, vector<1x32x128xf32>
    %30 = vector.shape_cast %29 : vector<1x32x128xf32> to vector<32x128xf32>
    %cst_19 = arith.constant dense<0.000000e+00> : vector<16x128xf32>
    %31 = tpu.matmul %28, %30, %cst_19 {dimension_numbers = #tpu.dot_dimension_numbers<[1], [0], [0], [1], [0, 0, 1, 1], [], []>} : vector<16x32xf32>, vector<32x128xf32>, vector<16x128xf32> -> vector<16x128xf32>
    %32 = vector.broadcast %2 : vector<1x128xf32> to vector<16x128xf32>
    %33 = arith.addf %31, %32 : vector<16x128xf32>
    %c0_20 = arith.constant 0 : index
    %c0_21 = arith.constant 0 : index
    %c128 = arith.constant 128 : index
    %34 = vector.load %arg5[%c0_20, %c0_21, %c128] : memref<1x16x256xf32, #tpu.memory_space<vmem>>, vector<1x16x128xf32>
    %35 = vector.shape_cast %34 : vector<1x16x128xf32> to vector<16x128xf32>
    %36 = vector.shape_cast %33 : vector<16x128xf32> to vector<1x16x128xf32>
    tpu.vector_store %arg5[%c0_20, %c0_21, %c128], %36 {strides = array<i32>} : memref<1x16x256xf32, #tpu.memory_space<vmem>>, vector<1x16x128xf32>,
    return
  }
  func.func @transform_0(%arg0: i32, %arg1: i32) -> (i32, i32, i32) {
    %c0_i32 = arith.constant 0 : i32
    %c0_i32_0 = arith.constant 0 : i32
    %c0_i32_1 = arith.constant 0 : i32
    return %arg0, %c0_i32, %c0_i32_0 : i32, i32, i32
  }
  func.func @transform_1(%arg0: i32, %arg1: i32) -> (i32, i32, i32) {
    %c0_i32 = arith.constant 0 : i32
    %c0_i32_0 = arith.constant 0 : i32
    %c0_i32_1 = arith.constant 0 : i32
    %c0_i32_2 = arith.constant 0 : i32
    return %c0_i32, %c0_i32_0, %c0_i32_1 : i32, i32, i32
  }
  func.func @transform_2(%arg0: i32, %arg1: i32) -> (i32, i32) {
    %c0_i32 = arith.constant 0 : i32
    %c0_i32_0 = arith.constant 0 : i32
    %c0_i32_1 = arith.constant 0 : i32
    return %c0_i32, %c0_i32_0 : i32, i32
  }
  func.func @transform_3(%arg0: i32, %arg1: i32) -> (i32, i32, i32) {
    %c0_i32 = arith.constant 0 : i32
    %c0_i32_0 = arith.constant 0 : i32
    return %arg0, %arg1, %c0_i32 : i32, i32, i32
  }
}

</mosaic_0001>

<bundles_post_ra>
// kernel: tpu_custom_call.1
= control target key start
LH: loop header
LB: loop body
LE: loop exit
PB: predicated region body
PF: predicated region fallthrough
CT: control target
= control target key end

     0   :  { %8 = vsyncpa [#allocation3], 0  ;;  %s715_s0 = inlined_call_operand.vmem [shape: f32[2,17,16], index: 0, kind: input, shape index: {}]   ;;  %s716_s1 = inlined_call_operand.vmem [shape: f32[2,32,128], index: 1, kind: input, shape index: {}]   ;;  %s717_s2 = inlined_call_operand.vmem [shape: f32[1,128], index: 2, kind: input, shape index: {}]   ;;  %s718_s3 = inlined_call_operand.hbm [shape: f32[2,16,256], index: 3, kind: output, shape index: {}]  }
   0x1   :  { %10 = vsyncpa [#allocation3 + $0x1], 0  ;;  %s580_s12 = smov 0   ;;  %s582_s13 = smov 0  }
   0x2   :  { %s584_s14 = smov 0   ;;  %s586_s15 = smov 0  }
   0x3   :  { %s588_s16 = smov 0   ;;  %s590_s17 = smov 0  }
   0x4 LB: > { %s388_s18 = sadd.s32 4294967295, %s556_s17   ;;  %s389_s19 = sadd.s32 4294967294, %s556_s17   ;;  %s556_s17 = sphi %s590_s17, %s16_s17   ;;  %s552_s16 = sphi %s588_s16, %s725_s16   ;;  %s548_s15 = sphi %s586_s15, %s724_s15   ;;  %s544_s14 = sphi %s584_s14, %s723_s14   ;;  %s540_s13 = sphi %s582_s13, %s722_s13   ;;  %s536_s12 = sphi %s580_s12, %s721_s12  }
   0x5   : > { %s28_s20 = sadd.s32 1, %s552_s16  ;;  %s105_s21 = sadd.s32 1, %s544_s14 }
   0x6   : > { %p30_p0 = scmp.ge.s32.totalorder %s28_s20, 2  ;;  %p115_p1 = scmp.ne.s32.totalorder %s544_s14, %s540_s13 }
   0x7   : > { %p116_p2 = scmp.eq.s32.totalorder %s388_s18, 1  ;;  %p121_p3 = scmp.ne.s32.totalorder %s540_s13, %s536_s12 }
   0x8   : > { %s727_s20 = smov (%p30_p0, %s28_s20), 0  ;;  %p122_p5 = scmp.eq.s32.totalorder %s389_s19, 1 }
   0x9   : > { %p620_p4 = por %p116_p2, %p115_p1  ;;  %s100_s23 = ssub.s32 %s552_s16, %s727_s20 }
   0xa   : > { %p392_p6 = scmp.ge.s32.totalorder %s556_s17, 1  ;;  %p103_p7 = scmp.eq.s32.totalorder %s100_s23, 0 }
   0xb   : > { %p627_p8 = por %p122_p5, %p121_p3  ;;  %p154_p9 = scmp.lt.s32.totalorder %s556_s17, 3 }
   0xc   : > { %s633_s25 = scalar_select %p103_p7, %s544_s14, %s105_s21  }
   0xd   : > { %p155_p10 = pnand %p392_p6, %p154_p9 }
   0xe   : > { %p178_p11 = scmp.lt.s32.totalorder (!%p155_p10), %s548_s15, 1  ;;  %s558_s10 = smov (!%p155_p10), 16  }
   0xf   : > { %158 = sbr.rel (%p155_p10) target bundleno = 288 (0x120), region = 32  ;;  %s175_s4 = sand.u32 (!%p155_p10), 1, %s540_s13  }
  0x10   : > { %s393_s5 = sshll.u32 (!%p155_p10), %s175_s4, 5  ;;  %s410_s11 = sshll.u32 (!%p155_p10), %s548_s15, 5 }
  0x11   : > { %s177_s8 = scalar_lea.vmem (!%p155_p10), [#allocation2], %s393_s5  ;;  %s306_s19 = scalar_lea.hbm (!%p155_p10), %s718_s3, %s410_s11 }
  0x12   : > { %s307_s21 = sshll.u32 (!%p155_p10), %s177_s8, 4  ;;  %s309_s23 = sshll.u32 (!%p155_p10), %s306_s19, 4  ;;  %s308_s21 = int_to_ptr.vmem [resolvable:$true] %s307_s21  ;;  %s310_s23 = int_to_ptr.hbm [resolvable:$true] %s309_s23 }
  0x13   : > { %s292_s26 = scalar_lea.sflag (!%p155_p10), [#allocation3], %s175_s4  ;;  %s492_s27 = sshra.s32 (!%p155_p10), %s310_s23, 4  ;;  %s493_s27 = int_to_ptr.hbm [resolvable:$true] %s492_s27 }
  0x14   : > { %v203_v0 = vld [vmem:[%s716_s1 + $0x18] sm:$0xff]  ;;  %v202_v1 = vld [vmem:[%s716_s1 + $0x10] sm:$0xff]  ;;  %s179_s30 = scalar_select %p178_p11, %s548_s15, 1  ;;  %v201_v2 = vld [vmem:[%s716_s1 + $0x8] sm:$0xff]  ;;  %vm197_vm0 = vcmask 130048   ;;  %vm207_vm1 = vcmask 261120  }
  0x15   : > { %411 = vmatpush.msra.mxu2 %v203_v0  ;;  %226 = vmatpush.msra.mxu0 %v203_v0  ;;  %v200_v5 = vld [vmem:[%s716_s1] sm:$0xff]  ;;  %v402_v6 = vld [vmem:[%s716_s1 + $0x38] sm:$0xff]  ;;  %v401_v7 = vld [vmem:[%s716_s1 + $0x30] sm:$0xff]  ;;  %s494_s15 = scalar_lea.hbm %s493_s27, 32  ;;  %p499_p1 = scmp.lt.s32.totalorder %s493_s27, %s718_s3 }
  0x16   : > { %s419_s6 = smul.u32 24, %s179_s30  ;;  %415 = vmatpush.msra.mxu3 %v402_v6  ;;  %278 = vmatpush.msra.mxu1 %v402_v6  ;;  %v400_v8 = vld [vmem:[%s716_s1 + $0x28] sm:$0xff]  ;;  %v399_v9 = vld [vmem:[%s716_s1 + $0x20] sm:$0xff]  ;;  %p495_p12 = scmp.ne.s32.totalorder %s493_s27, %s494_s15 }
  0x17   : > { %412 = vmatpush.msra.mxu2 %v202_v1  ;;  %227 = vmatpush.msra.mxu0 %v202_v1  ;;  %v477_v20 = vld [vmem:[%s717_s2] ss:$0 sm:$0xff]  ;;  %s498_s30 = scalar_lea.hbm %s718_s3, 64 }
  0x18   : > { %s649_s9 = scalar_lea.vmem %s715_s0, %s419_s6  ;;  %416 = vmatpush.msra.mxu3 %v401_v7  ;;  %279 = vmatpush.msra.mxu1 %v401_v7  ;;  %p496_p13 = pnand %p495_p12, %p620_p4 }
  0x19   : > { %413 = vmatpush.msra.mxu2 %v201_v2  ;;  %228 = vmatpush.msra.mxu0 %v201_v2  ;;  %v188_v3 = vld [vmem:[%s649_s9 + $0x8] sm:$0xff]  ;;  %v187_v4 = vld [vmem:[%s649_s9] sm:$0xff]  ;;  %p500_p2 = scmp.lt.s32.totalorder %s498_s30, %s494_s15 }
  0x1a   : > { %193 = vrot.lane.b32.xlu0 %v188_v3, %s558_s10  ;;  %191 = vrot.lane.b32.xlu1 %v187_v4, %s558_s10  ;;  %v398_v14 = vld [vmem:[%s649_s9 + $0x9] sm:$0xff]  ;;  %v397_v15 = vld [vmem:[%s649_s9 + $0x1] sm:$0xff]  ;;  %p497_p0 = pneg %p496_p13 }
  0x1b   : > { %414 = vmatpush.msra.mxu2 %v200_v5  ;;  %229 = vmatpush.msra.mxu0 %v200_v5  ;;  %p501_p3 = por %p500_p2, %p499_p1 }
  0x1c   : > { %417 = vmatpush.msra.mxu3 %v400_v8  ;;  %280 = vmatpush.msra.mxu1 %v400_v8 }
  0x1d   : > { %p502_p5 = pnand %p501_p3, %p497_p0 }
  0x1e   : > { %418 = vmatpush.msra.mxu3 %v399_v9  ;;  %281 = vmatpush.msra.mxu1 %v399_v9 }
  0x22   : > { %249 = vrot.lane.b32.xlu0 %v188_v3, %s558_s10  ;;  %247 = vrot.lane.b32.xlu1 %v187_v4, %s558_s10 }
  0x8c   : > { %v194_v10 = vpop.permute.xlu0 %193  ;;  %v192_v11 = vpop.permute.xlu1 %191 }
  0x8d   : > { %v199_v12 = vsel %vm197_vm0, %v188_v3, %v194_v10  ;;  %v198_v13 = vsel %vm197_vm0, %v187_v4, %v192_v11 }
  0x8e   : > { %396 = vmatmul.msk.f32.vlgmr.msra.gmra.mxu2 %vm207_vm1, %v199_v12  ;;  %395 = vmatmul.msk.f32.vlgmr.msra.gmra.mxu0 %vm207_vm1, %v198_v13 }
  0x94   : > { %v250_v16 = vpop.permute.xlu0 %249  ;;  %v248_v17 = vpop.permute.xlu1 %247 }
  0x95   : > { %v254_v18 = vsel %vm197_vm0, %v398_v14, %v250_v16  ;;  %v253_v19 = vsel %vm197_vm0, %v397_v15, %v248_v17 }
  0x96   : > { %404 = vmatmul.msk.f32.vlgmr.msra.gmra.mxu3 %vm207_vm1, %v254_v18  ;;  %403 = vmatmul.msk.f32.vlgmr.msra.gmra.mxu1 %vm207_vm1, %v253_v19 }
 0x10b   : > { %v231_v21 = vpop.f32.mrf.mxu0 }
 0x10c   : > { %v232_v22 = vadd.f32 %v477_v20, %v231_v21 }
 0x10e   : > { %237 = vst [vmem:[%s177_s8] sm:$0xff] %v232_v22 }
 0x111   : > { %v234_v23 = vpop.f32.mrf.mxu2 }
 0x112   : > { %v235_v24 = vadd.f32 %v477_v20, %v234_v23 }
 0x113   : > { %v283_v25 = vpop.f32.mrf.mxu1 }
 0x114   : > { %238 = vst [vmem:[%s177_s8 + $0x10] sm:$0xff] %v235_v24  ;;  %v284_v26 = vadd.f32 %v477_v20, %v283_v25 }
 0x116   : > { %289 = vst [vmem:[%s177_s8 + $0x8] sm:$0xff] %v284_v26 }
 0x119   : > { %v286_v27 = vpop.f32.mrf.mxu3 }
 0x11a   : > { %v287_v28 = vadd.f32 %v477_v20, %v286_v27 }
 0x11c   : > { %290 = vst [vmem:[%s177_s8 + $0x18] sm:$0xff] %v287_v28 }
 0x11d   : > { %505 = shalt.err (!%p502_p5)
}
 0x11e   : > { %s559_s4 = smov 256  }
 0x11f   : > { %420 = dma.vmem_to_hbm [thread:$0]  (%p620_p4), %s308_s21, 512, %s310_s23, %s292_s26, %s559_s4, %s559_s4, %s558_s10  }
 0x120 PF: > { %p426_p6 = scmp.ge.s32.totalorder %s556_s17, 2  ;;  %s324_s7 = sand.u32 1, %s536_s12  }
 0x121   : > { %s325_s8 = scalar_lea.sflag [#allocation3], %s324_s7 }
 0x122   : > { %p423_p7 = pnand %p426_p6, %p627_p8 }
 0x124   : > { %p424_p9 = pneg %p423_p7 }
 0x126   : > { %531 = dma.done.wait (%p424_p9), %s325_s8, 512  }
 0x127   : > { %533 = vsyncadd (%p424_p9), %s325_s8, 4294966784  ;;  %s16_s17 = sadd.s32 1, %s556_s17   ;;  %s721_s12 = smov %s540_s13 }
 0x128   : > { %p13_p10 = scmp.ge.s32.totalorder %s16_s17, 4   ;;  %s722_s13 = smov %s544_s14 }
 0x129   : > { %s723_s14 = smov %s633_s25  ;;  %s724_s15 = smov %s552_s16 }
 0x12a   : > { %s725_s16 = smov %s727_s20  ;;  %15 = sbr.rel (!%p13_p10) target bundleno = 4 (0x4), region = 70 }
 0x12f   :  { %331 = vsyncpa [#allocation3], 1 }
 0x130   :  { %333 = vsyncpa [#allocation3 + $0x1], 1 }

</bundles_post_ra>
